<compile_context>
chip_gen: v5e
topology: v5e:2x2
jax: 0.10.0
libtpu: 0.0.40
codegen_flags: <defaults>
</compile_context>

<pallas_src>
import jax
import jax.numpy as jnp
from jax.experimental import pallas as pl
from jax.experimental.pallas import tpu as pltpu


LANE = 128  # TPU lane width; hidden and output feature dims are padded to this.


def _round_up(n, m):
    return ((n + m - 1) // m) * m


# ----------------------------- Pallas kernel --------------------------------

def _mlp_kernel(blk_idx_ref, x_ref, w1_ref, b1_ref, w2_ref, b2_ref, o_ref):
    """Fused 2-layer MLP for one grid step (one sub-network's row block):
       o = relu(x @ W1 + b1) @ W2 + b2.

    `blk_idx_ref` is the scalar-prefetch ref (SMEM); weight selection already
    happened in the BlockSpec index_maps, so the body does not consume it.
    """
    del blk_idx_ref
    x = x_ref[...]                                            # (Rb, D)
    h = jnp.dot(x, w1_ref[...], preferred_element_type=jnp.float32) + b1_ref[...]
    h = jnp.maximum(h, 0.0)                                   # ReLU, f32 on the VPU
    y = jnp.dot(h, w2_ref[...], preferred_element_type=jnp.float32) + b2_ref[...]
    o_ref[...] = y.astype(o_ref.dtype)                        # lane-dense store (Op = 128)


def _mlp_pallas_grouped(blk_idx, xs_flat, w1, b1, w2, b2, *, rows_per_block):
    """One pallas_call; grid over groups of rows that share a sub-network.

    blk_idx  : [n_blocks] int32   sub-network index per grid step (scalar-prefetched)
    xs_flat  : [R, D]             stacked inputs, R = n_blocks * rows_per_block
    w1       : [N, D, Hp]   b1 : [N, 1, Hp]    (Hp = H padded to 128)
    w2       : [N, Hp, Op]  b2 : [N, 1, Op]    (Op = O padded to 128)
    returns [R, Op] float32
    """
    R, D = xs_flat.shape
    Hp = w1.shape[2]
    Op = w2.shape[2]
    assert R % rows_per_block == 0
    n_blocks = R // rows_per_block
    assert blk_idx.shape == (n_blocks,)
    assert rows_per_block % 8 == 0, "row block must be a multiple of 8 sublanes"

    sq = pl.Squeezed()  # leading size-1 block dim, squeezed out of the kernel view
    grid_spec = pltpu.PrefetchScalarGridSpec(
        num_scalar_prefetch=1,
        grid=(n_blocks,),
        in_specs=[
            pl.BlockSpec((rows_per_block, D), lambda i, idx: (i, 0)),       # x rows
            pl.BlockSpec((sq, D, Hp),  lambda i, idx: (idx[i], 0, 0)),      # W1[idx]
            pl.BlockSpec((sq, 1, Hp),  lambda i, idx: (idx[i], 0, 0)),      # b1[idx]
            pl.BlockSpec((sq, Hp, Op), lambda i, idx: (idx[i], 0, 0)),      # W2[idx]
            pl.BlockSpec((sq, 1, Op),  lambda i, idx: (idx[i], 0, 0)),      # b2[idx]
        ],
        out_specs=pl.BlockSpec((rows_per_block, Op), lambda i, idx: (i, 0)),
    )
    return pl.pallas_call(
        _mlp_kernel,
        out_shape=jax.ShapeDtypeStruct((R, Op), jnp.float32),
        grid_spec=grid_spec,
        # "parallel" string is a codegen no-op; steps use distinct weights so
        # there is no cross-step reuse to protect -> "arbitrary".
        compiler_params=pltpu.CompilerParams(dimension_semantics=("arbitrary",)),
    )(blk_idx, xs_flat, w1, b1, w2, b2)


# --------------------------- parameter construction --------------------------

def init_params(key, num_networks, d_in, d_hidden, d_out):
    """Per-sub-network MLP parameters, stacked on axis 0. Hidden and output
    feature dims are zero-padded to the lane width once at init time so every
    matmul operand / intermediate is lane-dense inside the kernel."""
    h_pad = _round_up(d_hidden, LANE)
    o_pad = _round_up(d_out, LANE)
    k1, k2, k3, k4 = jax.random.split(key, 4)
    s1 = 1.0 / jnp.sqrt(d_in)
    s2 = 1.0 / jnp.sqrt(d_hidden)
    w1 = jax.random.normal(k1, (num_networks, d_in, d_hidden), jnp.float32) * s1
    b1 = jax.random.normal(k2, (num_networks, 1, d_hidden), jnp.float32) * s1
    w2 = jax.random.normal(k3, (num_networks, d_hidden, d_out), jnp.float32) * s2
    b2 = jax.random.normal(k4, (num_networks, 1, d_out), jnp.float32) * s2
    w1p = jnp.zeros((num_networks, d_in, h_pad), jnp.float32).at[..., :d_hidden].set(w1)
    b1p = jnp.zeros((num_networks, 1, h_pad), jnp.float32).at[..., :d_hidden].set(b1)
    w2p = jnp.zeros((num_networks, h_pad, o_pad), jnp.float32).at[:, :d_hidden, :d_out].set(w2)
    b2p = jnp.zeros((num_networks, 1, o_pad), jnp.float32).at[..., :d_out].set(b2)
    return {"w1": w1p, "b1": b1p, "w2": w2p, "b2": b2p}


# --------------------------- ModelFull wrappers -------------------------------

def model_full_forward_batch(ts, xs, params, out_features, *,
                             is_discretized=False, ts_per_network=1):
    """Batched ModelFull.forward: evaluates T stacked (t, x) pairs in ONE
    pallas_call with the grid coarsened over sub-networks.

    ts : [T] integer timesteps (contiguous schedule: every block of
         `ts_per_network` consecutive timesteps shares one t_idx),
    xs : [T, B, D].
    """
    ts = jnp.asarray(ts, jnp.int32)
    T, B, D = xs.shape
    n_nets = params["w1"].shape[0]

    if is_discretized:
        # Clamp: an out-of-range t would otherwise drive the weight index_map
        # out of bounds (Pallas performs no bounds check on block offsets).
        t_idx = jnp.clip(ts // ts_per_network, 0, n_nets - 1)
        tb = ts_per_network
        # t_remainder = ones((B,1)) * (t % ts_per_network) — faithful to the
        # PyTorch module but unused by the MLP sub-network (see TODO header).
    else:
        t_idx = jnp.zeros_like(ts)     # single network -> one grid step total
        tb = T

    assert T % tb == 0, "T must be a multiple of the per-network block size"
    n_blocks = T // tb
    # One sub-network index per grid block (timesteps inside a block share it).
    blk_idx = t_idx.reshape(n_blocks, tb)[:, 0].astype(jnp.int32)

    xs_flat = xs.reshape(T * B, D)                 # free reshape in HBM
    out_flat = _mlp_pallas_grouped(blk_idx, xs_flat,
                                   params["w1"], params["b1"],
                                   params["w2"], params["b2"],
                                   rows_per_block=tb * B)
    out = out_flat.reshape(T, B, -1)
    return out[..., :out_features]


def model_full_forward(tup, params, out_features, *,
                       is_discretized=False, ts_per_network=1):
    """JAX equivalent of ModelFull.forward(tup) with tup = (t, x) for a SINGLE
    call. Per the performance review this does NOT go through a T=1
    pallas_call (pure dispatch overhead at these sizes); schedule-level
    evaluation should use model_full_forward_batch (the Pallas path)."""
    t, x = tup
    n_nets = params["w1"].shape[0]
    if is_discretized:
        t = jnp.asarray(t, jnp.int32)
        t_idx = jnp.clip(t // ts_per_network, 0, n_nets - 1)
        # Faithful to PyTorch: torch.ones((B,1)).long() * (t % ts_per_network)
        t_remainder = jnp.ones((x.shape[0], 1), jnp.int32) * (t % ts_per_network)
        del t_remainder  # TODO(synk): unused by the MLP sub-network.
    else:
        t_idx = 0
    w1 = params["w1"][t_idx]
    b1 = params["b1"][t_idx]
    w2 = params["w2"][t_idx]
    b2 = params["b2"][t_idx]
    h = jnp.maximum(x @ w1 + b1, 0.0)
    y = h @ w2 + b2
    return y[..., :out_features]


# --------------------------------- main --------------------------------------

if __name__ == "__main__":
    key = jax.random.PRNGKey(0)
    kp, kx, kb = jax.random.split(key, 3)

    B, D, H, O = 8, 32, 64, 16          # batch, in-features, hidden, out-features
    NUM_NETWORKS = 3
    TS_PER_NETWORK = 2

    params = init_params(kp, NUM_NETWORKS, D, H, O)

    # Plain-JAX reference (padding is zeros, so padded params give identical
    # logical outputs in the first O columns).
    def ref(xi, i):
        h = jnp.maximum(xi @ params["w1"][i] + params["b1"][i], 0.0)
        return (h @ params["w2"][i] + params["b2"][i])[..., :O]

    # --- Pallas path, discretized: T = 6 timesteps (t_idx = [0,0,1,1,2,2]),
    #     ONE pallas_call, grid coarsened to 3 sub-network blocks of 16 rows.
    T = NUM_NETWORKS * TS_PER_NETWORK
    ts = jnp.arange(T, dtype=jnp.int32)
    xs = jax.random.normal(kb, (T, B, D), jnp.float32)
    y_disc = jax.block_until_ready(
        model_full_forward_batch(ts, xs, params, O,
                                 is_discretized=True,
                                 ts_per_network=TS_PER_NETWORK))
    assert y_disc.shape == (T, B, O)
    for i in range(T):
        assert jnp.allclose(y_disc[i], ref(xs[i], i // TS_PER_NETWORK),
                            atol=1e-4, rtol=1e-4)

    # --- Pallas path, non-discretized: all timesteps -> network 0, one grid
    #     step over all 48 rows.
    y_plain_b = jax.block_until_ready(
        model_full_forward_batch(ts, xs, params, O, is_discretized=False))
    assert y_plain_b.shape == (T, B, O)
    for i in range(T):
        assert jnp.allclose(y_plain_b[i], ref(xs[i], 0), atol=1e-4, rtol=1e-4)

    # --- Single (t, x) calls (both forward branches), plain-jnp fallback.
    x = jax.random.normal(kx, (B, D), jnp.float32)
    y0 = jax.block_until_ready(
        model_full_forward((0, x), params, O, is_discretized=False))
    y1 = jax.block_until_ready(
        model_full_forward((3, x), params, O,
                           is_discretized=True, ts_per_network=TS_PER_NETWORK))
    assert y0.shape == (B, O) and y1.shape == (B, O)
    assert jnp.allclose(y0, ref(x, 0), atol=1e-4, rtol=1e-4)
    assert jnp.allclose(y1, ref(x, 1), atol=1e-4, rtol=1e-4)   # t=3 -> sub-net 1

    print("KERNEL_OK")
</pallas_src>

<mosaic_0001>
module attributes {stable_mosaic.version = 11 : i64} {
  func.func @_mlp_kernel(%arg0: i32, %arg1: memref<3xi32, #tpu.memory_space<smem>>, %arg2: memref<16x32xf32, #tpu.memory_space<vmem>>, %arg3: memref<1x32x128xf32, #tpu.memory_space<vmem>>, %arg4: memref<1x1x128xf32, #tpu.memory_space<vmem>>, %arg5: memref<1x128x128xf32, #tpu.memory_space<vmem>>, %arg6: memref<1x1x128xf32, #tpu.memory_space<vmem>>, %arg7: memref<16x128xf32, #tpu.memory_space<vmem>>) attributes {dimension_semantics = [#tpu.dimension_semantics<arbitrary>], iteration_bounds = array<i64: 3>, scalar_prefetch = 1 : i64, scratch_operands = 0 : i64, tpu.core_type = #tpu.core_type<tc>, window_params = [{transform_indices = @transform_0, window_bounds = array<i64: 16, 32>}, {transform_indices = @transform_1, window_bounds = array<i64: 1, 32, 128>}, {transform_indices = @transform_2, window_bounds = array<i64: 1, 1, 128>}, {transform_indices = @transform_3, window_bounds = array<i64: 1, 128, 128>}, {transform_indices = @transform_4, window_bounds = array<i64: 1, 1, 128>}, {transform_indices = @transform_5, window_bounds = array<i64: 16, 128>}]} {
    %c0 = arith.constant 0 : index
    %c0_0 = arith.constant 0 : index
    %0 = vector.load %arg2[%c0, %c0_0] : memref<16x32xf32, #tpu.memory_space<vmem>>, vector<16x32xf32>
    %c0_1 = arith.constant 0 : index
    %c0_2 = arith.constant 0 : index
    %c0_3 = arith.constant 0 : index
    %1 = vector.load %arg3[%c0_1, %c0_2, %c0_3] : memref<1x32x128xf32, #tpu.memory_space<vmem>>, vector<1x32x128xf32>
    %2 = vector.shape_cast %1 : vector<1x32x128xf32> to vector<32x128xf32>
    %cst = arith.constant dense<0.000000e+00> : vector<16x128xf32>
    %3 = tpu.matmul %0, %2, %cst {dimension_numbers = #tpu.dot_dimension_numbers<[1], [0], [0], [1], [0, 0, 1, 1], [], []>} : vector<16x32xf32>, vector<32x128xf32>, vector<16x128xf32> -> vector<16x128xf32>
    %c0_4 = arith.constant 0 : index
    %c0_5 = arith.constant 0 : index
    %c0_6 = arith.constant 0 : index
    %4 = vector.load %arg4[%c0_4, %c0_5, %c0_6] : memref<1x1x128xf32, #tpu.memory_space<vmem>>, vector<1x1x128xf32>
    %5 = vector.shape_cast %4 : vector<1x1x128xf32> to vector<1x128xf32>
    %6 = vector.broadcast %5 : vector<1x128xf32> to vector<16x128xf32>
    %7 = arith.addf %3, %6 : vector<16x128xf32>
    %cst_7 = arith.constant 0.000000e+00 : f32
    %8 = vector.broadcast %cst_7 : f32 to vector<16x128xf32>
    %9 = arith.maximumf %7, %8 : vector<16x128xf32>
    %c0_8 = arith.constant 0 : index
    %c0_9 = arith.constant 0 : index
    %c0_10 = arith.constant 0 : index
    %10 = vector.load %arg5[%c0_8, %c0_9, %c0_10] : memref<1x128x128xf32, #tpu.memory_space<vmem>>, vector<1x128x128xf32>
    %11 = vector.shape_cast %10 : vector<1x128x128xf32> to vector<128x128xf32>
    %cst_11 = arith.constant dense<0.000000e+00> : vector<16x128xf32>
    %12 = tpu.matmul %9, %11, %cst_11 {dimension_numbers = #tpu.dot_dimension_numbers<[1], [0], [0], [1], [0, 0, 1, 1], [], []>} : vector<16x128xf32>, vector<128x128xf32>, vector<16x128xf32> -> vector<16x128xf32>
    %c0_12 = arith.constant 0 : index
    %c0_13 = arith.constant 0 : index
    %c0_14 = arith.constant 0 : index
    %13 = vector.load %arg6[%c0_12, %c0_13, %c0_14] : memref<1x1x128xf32, #tpu.memory_space<vmem>>, vector<1x1x128xf32>
    %14 = vector.shape_cast %13 : vector<1x1x128xf32> to vector<1x128xf32>
    %15 = vector.broadcast %14 : vector<1x128xf32> to vector<16x128xf32>
    %16 = arith.addf %12, %15 : vector<16x128xf32>
    %c0_15 = arith.constant 0 : index
    %c0_16 = arith.constant 0 : index
    %17 = vector.load %arg7[%c0_15, %c0_16] : memref<16x128xf32, #tpu.memory_space<vmem>>, vector<16x128xf32>
    tpu.vector_store %arg7[%c0_15, %c0_16], %16 {strides = array<i32>} : memref<16x128xf32, #tpu.memory_space<vmem>>, vector<16x128xf32>,
    return
  }
  func.func @transform_0(%arg0: i32, %arg1: memref<3xi32, #tpu.memory_space<smem>>) -> (i32, i32) {
    %c0_i32 = arith.constant 0 : i32
    %c0_i32_0 = arith.constant 0 : i32
    return %arg0, %c0_i32 : i32, i32
  }
  func.func @transform_1(%arg0: i32, %arg1: memref<3xi32, #tpu.memory_space<smem>>) -> (i32, i32, i32) {
    %0 = arith.index_cast %arg0 : i32 to index
    %1 = memref.load %arg1[%0] : memref<3xi32, #tpu.memory_space<smem>>
    %c0_i32 = arith.constant 0 : i32
    %c0_i32_0 = arith.constant 0 : i32
    %c0_i32_1 = arith.constant 0 : i32
    return %1, %c0_i32, %c0_i32_0 : i32, i32, i32
  }
  func.func @transform_2(%arg0: i32, %arg1: memref<3xi32, #tpu.memory_space<smem>>) -> (i32, i32, i32) {
    %0 = arith.index_cast %arg0 : i32 to index
    %1 = memref.load %arg1[%0] : memref<3xi32, #tpu.memory_space<smem>>
    %c0_i32 = arith.constant 0 : i32
    %c0_i32_0 = arith.constant 0 : i32
    %c0_i32_1 = arith.constant 0 : i32
    return %1, %c0_i32, %c0_i32_0 : i32, i32, i32
  }
  func.func @transform_3(%arg0: i32, %arg1: memref<3xi32, #tpu.memory_space<smem>>) -> (i32, i32, i32) {
    %0 = arith.index_cast %arg0 : i32 to index
    %1 = memref.load %arg1[%0] : memref<3xi32, #tpu.memory_space<smem>>
    %c0_i32 = arith.constant 0 : i32
    %c0_i32_0 = arith.constant 0 : i32
    %c0_i32_1 = arith.constant 0 : i32
    return %1, %c0_i32, %c0_i32_0 : i32, i32, i32
  }
  func.func @transform_4(%arg0: i32, %arg1: memref<3xi32, #tpu.memory_space<smem>>) -> (i32, i32, i32) {
    %0 = arith.index_cast %arg0 : i32 to index
    %1 = memref.load %arg1[%0] : memref<3xi32, #tpu.memory_space<smem>>
    %c0_i32 = arith.constant 0 : i32
    %c0_i32_0 = arith.constant 0 : i32
    %c0_i32_1 = arith.constant 0 : i32
    return %1, %c0_i32, %c0_i32_0 : i32, i32, i32
  }
  func.func @transform_5(%arg0: i32, %arg1: memref<3xi32, #tpu.memory_space<smem>>) -> (i32, i32) {
    %c0_i32 = arith.constant 0 : i32
    %c0_i32_0 = arith.constant 0 : i32
    return %arg0, %c0_i32 : i32, i32
  }
}

</mosaic_0001>

<bundles_post_ra>
// kernel: tpu_custom_call.1
= control target key start
LH: loop header
LB: loop body
LE: loop exit
PB: predicated region body
PF: predicated region fallthrough
CT: control target
= control target key end

     0   :  { %s947_s24 = smov [#allocation3]   ;;  %s1281_s0 = inlined_call_operand.vmem [shape: s32[3], index: 0, kind: input, shape index: {}]   ;;  %s1282_s1 = inlined_call_operand.vmem [shape: f32[48,32], index: 1, kind: input, shape index: {}]   ;;  %s1283_s2 = inlined_call_operand.hbm [shape: f32[3,32,128], index: 2, kind: input, shape index: {}]   ;;  %s1284_s3 = inlined_call_operand.vmem [shape: f32[3,1,128], index: 3, kind: input, shape index: {}]   ;;  %s1285_s4 = inlined_call_operand.hbm [shape: f32[3,128,128], index: 4, kind: input, shape index: {}]   ;;  %s1286_s5 = inlined_call_operand.vmem [shape: f32[3,1,128], index: 5, kind: input, shape index: {}]   ;;  %s1287_s6 = inlined_call_operand.hbm [shape: f32[48,128], index: 6, kind: output, shape index: {}]  }
   0x1   :  { %1300 = sst [smem:[#allocation26_spill]] %s1283_s2  ;;  %s12_s23 = sshll.u32 %s1281_s0, 4  ;;  %s13_s23 = int_to_ptr.vmem [resolvable:$true] %s12_s23 }
   0x2   :  { %1301 = sst [smem:[#allocation27_spill]] %s1287_s6 }
   0x3   :  { %15 = dma.vmem_to_smem %s13_s23, 16, %s947_s24, [#allocation2] }
   0x4   :  { %893 = dma.done.wait [#allocation2], 16 }
   0x5   :  { %894 = vsyncadd [#allocation2], 4294967280 }
   0x6   :  { %18 = sfence }
   0x7   :  { %19 = vsyncpa [#allocation5], 0 }
   0x8   :  { %21 = vsyncpa [#allocation5 + $0x1], 0 }
   0x9   :  { %22 = vsyncpa [#allocation8], 0 }
   0xa   :  { %24 = vsyncpa [#allocation8 + $0x1], 0 }
   0xb   :  { %25 = vsyncpa [#allocation6], 0 }
   0xc   :  { %27 = vsyncpa [#allocation6 + $0x1], 0  ;;  %s990_s25 = smov 0   ;;  %s992_s26 = smov 0  }
   0xd   :  { %s994_s27 = smov 0   ;;  %s996_s28 = smov 0  }
   0xe   :  { %s998_s0 = smov 0   ;;  %s1000_s29 = smov 0  }
   0xf   :  { %s1002_s30 = smov 0   ;;  %s1004_s7 = smov 0  }
  0x10   :  { %s1006_s8 = smov 0   ;;  %s1008_s9 = smov 0  }
  0x11 LB: > { %1302 = sst [smem:[#allocation18_spill]] %s909_s25  ;;  %s1039_s10 = sadd.s32 4294967295, %s945_s9   ;;  %s945_s9 = sphi %s1008_s9, %s1344_s9   ;;  %s941_s8 = sphi %s1006_s8, %s1336_s8   ;;  %s937_s7 = sphi %s1004_s7, %s1343_s7   ;;  %s933_s30 = sphi %s1002_s30, %s1342_s30   ;;  %s929_s29 = sphi %s1000_s29, %s1341_s29   ;;  %s925_s0 = sphi %s998_s0, %s1340_s0   ;;  %s921_s28 = sphi %s996_s28, %s1339_s28   ;;  %s917_s27 = sphi %s994_s27, %s1333_s27   ;;  %s913_s26 = sphi %s992_s26, %s1338_s26   ;;  %s909_s25 = sphi %s990_s25, %s1337_s25  }
  0x12   : > { %1303 = sst [smem:[#allocation19_spill]] %s917_s27  ;;  %s598_s11 = sadd.s32 4294967294, %s945_s9  }
  0x13   : > { %1304 = sst [smem:[#allocation20_spill]] %s941_s8  ;;  %s1043_s12 = sadd.s32 1, %s945_s9  }
  0x14   : > { %s63_s13 = sld [smem:[#allocation3 + %s945_s9]]  ;;  %s68_s15 = sadd.s32 1, %s941_s8 }
  0x15   : > { %s64_s14 = sld [smem:[#allocation3 + %s1043_s12]]  ;;  %p75_p0 = scmp.ne.s32.totalorder %s941_s8, %s937_s7 }
  0x16   : > { %p1297_p1 = scmp.eq.s32.totalorder %s945_s9, 0  ;;  %p81_p2 = scmp.ne.s32.totalorder %s937_s7, %s933_s30 }
  0x17   : > { %p82_p3 = scmp.eq.s32.totalorder %s1039_s10, 0  ;;  %s175_s17 = ssub.s32 %s945_s9, %s1043_s12 }
  0x18   : > { %p1055_p4 = por %p1297_p1, %p75_p0  ;;  %p176_p6 = scmp.eq.s32.totalorder %s175_s17, 0 }
  0x19   : > { %p1063_p5 = por %p82_p3, %p81_p2  ;;  %s178_s19 = sadd.s32 1, %s917_s27 }
  0x1a   : > { %p188_p7 = scmp.ne.s32.totalorder %s917_s27, %s913_s26  ;;  %p189_p8 = scmp.eq.s32.totalorder %s1039_s10, 2 }
  0x1b   : > { %s65_s20 = ssub.s32 %s63_s13, %s64_s14  ;;  %p194_p10 = scmp.ne.s32.totalorder %s913_s26, %s909_s25 }
  0x1c   : > { %p66_p9 = scmp.eq.s32.totalorder %s65_s20, 0  ;;  %p1079_p11 = por %p189_p8, %p188_p7 }
  0x1d   : > { %s1074_s21 = scalar_select %p176_p6, %s917_s27, %s178_s19  }
  0x1e   : > { %s1077_s22 = scalar_select %p66_p9, %s941_s8, %s68_s15  }
  0x1f   : > { %1307 = sst [smem:[#allocation21_spill]] %s1074_s21  ;;  %p195_p12 = scmp.eq.s32.totalorder %s598_s11, 2 }
  0x20   : > { %1308 = sst [smem:[#allocation22_spill]] %s1077_s22  ;;  %p1296_p13 = scmp.lt.s32.totalorder %s945_s9, 3 }
  0x21   : > { %s1309_s23 = scalar_select %p1079_p11, 1, 0 }
  0x22   : > { %p1084_p0 = por %p195_p12, %p194_p10  ;;  %s224_s30 = sand.u32 1, %s941_s8  }
  0x23   : > { %1310 = sst [smem:[#allocation23_spill]] %s1309_s23  ;;  %s601_s13 = sshll.u32 %s224_s30, 5 }
  0x24   : > { %s1311_s24 = scalar_select %p1084_p0, 1, 0 }
  0x25   : > { %p1093_p2 = pnand %p1296_p13, %p1055_p4  ;;  %s228_s11 = scalar_lea.vmem [#allocation4], %s601_s13 }
  0x26   : > { %1312 = sst [smem:[#allocation24_spill]] %s1311_s24  ;;  %s1106_s19 = sshll.u32 %s228_s11, 4 }
  0x27   : > { %s639_s15 = scalar_select %p1055_p4, [#allocation3], [#allocation10] }
  0x28   : > { %s640_s17 = scalar_select %p1055_p4, %s945_s9, 0 }
  0x29   : > { %s1346_s15 = smov (!%p1296_p13, %s639_s15), [#allocation12]  ;;  %1314 = sst [smem:[#allocation25_spill]] %s1106_s19 }
  0x2a   : > { %s1348_s17 = smov (!%p1296_p13, %s640_s17), 0  ;;  %p607_p6 = scmp.ge.s32.totalorder %s945_s9, 1 }
  0x2b   : > { %s229_s20 = sld [smem:[%s1346_s15 + %s1348_s17]]  ;;  %p284_p7 = scmp.lt.s32.totalorder %s945_s9, 4 }
  0x2c   : > { %s1316_s2 = sld [smem:[#allocation26_spill]]  ;;  %s225_s11 = scalar_lea.sflag [#allocation5], %s224_s30 }
  0x2d   : > { %p1111_p8 = pnand %p607_p6, %p284_p7  ;;  %s119_s24 = sld [smem:[#allocation3 + %s945_s9]] }
  0x2e   : > { %s120_s13 = sld [smem:[#allocation3 + %s1043_s12]]  ;;  %p769_p9 = pneg %p1093_p2 }
  0x31   : > { %s620_s8 = sshll.u32 %s229_s20, 5 }
  0x32   : > { %s234_s27 = scalar_lea.hbm %s1316_s2, %s620_s8  ;;  %s772_s20 = scalar_lea.hbm %s1316_s2, 96 }
  0x33   : > { %s235_s25 = sshll.u32 %s234_s27, 4  ;;  %s236_s25 = int_to_ptr.hbm [resolvable:$true] %s235_s25 }
  0x34   : > { %s765_s6 = sshra.s32 %s236_s25, 4  ;;  %s766_s6 = int_to_ptr.hbm [resolvable:$true] %s765_s6 }
  0x35   : > { %s767_s15 = scalar_lea.hbm %s766_s6, 32  ;;  %p773_p6 = scmp.lt.s32.totalorder %s766_s6, %s1316_s2 }
  0x36   : > { %p768_p4 = scmp.ne.s32.totalorder %s766_s6, %s767_s15  ;;  %p774_p7 = scmp.lt.s32.totalorder %s772_s20, %s767_s15 }
  0x38   : > { %p770_p10 = pnand %p769_p9, %p768_p4  ;;  %p775_p13 = por %p774_p7, %p773_p6 }
  0x3a   : > { %p771_p12 = pneg %p770_p10 }
  0x3c   : > { %p776_p1 = pnand %p775_p13, %p771_p12 }
  0x3e   : > { %779 = shalt.err (!%p776_p1)
}
  0x3f   : > { %s1298_s27 = smov 128   ;;  %s1317_s8 = sld [smem:[#allocation25_spill]] }
  0x40   : > { %s1299_s6 = smov 8   ;;  %p131_p1 = scmp.ne.s32.totalorder %s929_s29, %s925_s0 }
  0x41   : > { %p137_p13 = scmp.ne.s32.totalorder %s925_s0, %s921_s28  ;;  %s124_s30 = sadd.s32 1, %s929_s29 }
  0x42   : > { %s255_s16 = sand.u32 1, %s929_s29   ;;  %s121_s15 = ssub.s32 %s119_s24, %s120_s13 }
  0x43   : > { %p1142_p4 = por %p137_p13, %p82_p3  ;;  %p1320_p9 = scmp.eq.s32.totalorder %s945_s9, 0 }
  0x44   : > { %p122_p12 = scmp.eq.s32.totalorder %s121_s15, 0  ;;  %s604_s14 = sshll.u32 %s255_s16, 7 }
  0x45   : > { %s1318_s23 = int_to_ptr.vmem [resolvable:$true] %s1317_s8  ;;  %p133_p10 = por %p131_p1, %p1320_p9 }
  0x46   : > { %654 = dma.hbm_to_vmem [thread:$0]  (!%p1093_p2), %s236_s25, 512, %s1318_s23, %s225_s11, %s1298_s27, %s1298_s27, %s1299_s6  }
  0x47   : > { %p1321_p6 = scmp.lt.s32.totalorder %s945_s9, 3  ;;  %s259_s24 = scalar_lea.vmem [#allocation7], %s604_s14 }
  0x48   : > { %s1156_s25 = scalar_select %p122_p12, %s929_s29, %s124_s30  }
  0x49   : > { %p1151_p7 = pnand %p1321_p6, %p133_p10  ;;  %p1323_p2 = pmov %p1321_p6 }
  0x4a   : > { %s642_s28 = scalar_select %p133_p10, [#allocation3], [#allocation11] }
  0x4b   : > { %s643_s11 = scalar_select %p133_p10, %s945_s9, 0 }
  0x4c   : > { %s1350_s28 = smov (!%p1323_p2, %s642_s28), [#allocation13]  ;;  %p1324_p3 = pmov %p1323_p2 }
  0x4d   : > { %s268_s13 = sshll.u32 %s259_s24, 4  ;;  %s256_s30 = scalar_lea.sflag [#allocation8], %s255_s16  ;;  %s269_s13 = int_to_ptr.vmem [resolvable:$true] %s268_s13 }
  0x4e   : > { %s1352_s11 = smov (!%p1324_p3, %s643_s11), 0  ;;  %p799_p13 = pneg %p1151_p7 }
  0x4f   : > { %s260_s20 = sld [smem:[%s1350_s28 + %s1352_s11]]  ;;  %s802_s11 = scalar_lea.hbm %s1285_s4, 384 }
  0x55   : > { %s621_s21 = sshll.u32 %s260_s20, 7 }
  0x56   : > { %s265_s15 = scalar_lea.hbm %s1285_s4, %s621_s21 }
  0x57   : > { %s266_s27 = sshll.u32 %s265_s15, 4  ;;  %s267_s27 = int_to_ptr.hbm [resolvable:$true] %s266_s27 }
  0x58   : > { %s795_s6 = sshra.s32 %s267_s27, 4  ;;  %s796_s6 = int_to_ptr.hbm [resolvable:$true] %s795_s6 }
  0x59   : > { %s797_s2 = scalar_lea.hbm %s796_s6, 128  ;;  %p803_p12 = scmp.lt.s32.totalorder %s796_s6, %s1285_s4 }
  0x5a   : > { %p798_p1 = scmp.ne.s32.totalorder %s796_s6, %s797_s2  ;;  %p804_p6 = scmp.lt.s32.totalorder %s802_s11, %s797_s2 }
  0x5c   : > { %p800_p9 = pnand %p799_p13, %p798_p1  ;;  %p805_p2 = por %p804_p6, %p803_p12 }
  0x5e   : > { %p801_p10 = pneg %p800_p9 }
  0x60   : > { %p806_p3 = pnand %p805_p2, %p801_p10 }
  0x62   : > { %809 = shalt.err (!%p806_p3)
}
  0x63   : > { %s1325_s16 = smov 8   ;;  %s1326_s21 = smov 128  }
  0x64   : > { %659 = dma.hbm_to_vmem [thread:$0]  (!%p1151_p7), %s267_s27, 2048, %s269_s13, %s256_s30, %s1326_s21, %s1326_s21, %s1325_s16  }
  0x65   : > { %288 = sbr.rel (%p1111_p8) target bundleno = 395 (0x18b), region = 40  ;;  %s290_s8 = sand.u32 (!%p1111_p8), 1, %s937_s7  }
  0x66   : > { %s608_s23 = sshll.u32 (!%p1111_p8), %s290_s8, 5  ;;  %s291_s15 = scalar_lea.sflag (!%p1111_p8), [#allocation5], %s290_s8 }
  0x67   : > { %s294_s28 = scalar_lea.vmem (!%p1111_p8), [#allocation4], %s608_s23 }
  0x6a   : > { %896 = dma.done.wait (%p1063_p5), %s291_s15, 512  }
  0x6b   : > { %898 = vsyncadd (%p1063_p5), %s291_s15, 4294966784  ;;  %s300_s2 = sand.u32 1, %s925_s0  }
  0x6c   : > { %s609_s6 = sshll.u32 %s300_s2, 7  ;;  %s301_s17 = scalar_lea.sflag [#allocation8], %s300_s2 }
  0x6d   : > { %s1187_s27 = scalar_lea.vmem [#allocation7], %s609_s6 }
  0x6e   : > { %900 = dma.done.wait (%p1142_p4), %s301_s17, 2048  }
  0x6f   : > { %902 = vsyncadd (%p1142_p4), %s301_s17, 4294965248  ;;  %s611_s22 = sshll.u32 %s1039_s10, 1  ;;  %s357_s18 = sld [smem:[#allocation3 + %s1039_s10]]  ;;  %v374_v0 = vld [vmem:[%s294_s28 + $0x18] sm:$0xff]  ;;  %v373_v1 = vld [vmem:[%s294_s28 + $0x10] sm:$0xff]  ;;  %vm379_vm0 = vcmask 261120  }
  0x70   : > { %p351_p8 = scmp.lt.s32.totalorder %s611_s22, 5  ;;  %398 = vmatpush.msra.mxu0 %v374_v0  ;;  %v372_v2 = vld [vmem:[%s294_s28 + $0x8] sm:$0xff]  ;;  %v426_v3 = vld [vmem:[%s1187_s27 + $0x78] sm:$0xff]  ;;  %v425_v4 = vld [vmem:[%s1187_s27 + $0x70] sm:$0xff]  ;;  %s363_s16 = sld [smem:[#allocation3 + %s1039_s10]] }
  0x71   : > { %431 = vmatpush.msra.mxu1 %v426_v3  ;;  %v371_v5 = vld [vmem:[%s294_s28] sm:$0xff]  ;;  %v424_v6 = vld [vmem:[%s1187_s27 + $0x68] sm:$0xff]  ;;  %623 = vmatpush.msra.mxu2 %v426_v3  ;;  %v422_v9 = vld [vmem:[%s1187_s27 + $0x58] sm:$0xff]  ;;  %s347_s2 = sand.u32 1, %s913_s26   ;;  %s1328_s30 = sld [smem:[#allocation27_spill]] }
  0x72   : > { %s1354_s22 = smov (!%p351_p8, %s611_s22), 5  ;;  %399 = vmatpush.msra.mxu0 %v373_v1  ;;  %v423_v8 = vld [vmem:[%s1187_s27 + $0x60] sm:$0xff]  ;;  %v421_v10 = vld [vmem:[%s1187_s27 + $0x50] sm:$0xff]  ;;  %v420_v11 = vld [vmem:[%s1187_s27 + $0x48] sm:$0xff]  ;;  %s610_s6 = sshll.u32 %s347_s2, 4 }
  0x73   : > { %s612_s13 = sshll.u32 %s1354_s22, 3  ;;  %432 = vmatpush.msra.mxu1 %v425_v4  ;;  %624 = vmatpush.msra.mxu2 %v425_v4  ;;  %v419_v13 = vld [vmem:[%s1187_s27 + $0x40] sm:$0xff]  ;;  %v418_v14 = vld [vmem:[%s1187_s27 + $0x38] sm:$0xff]  ;;  %v417_v15 = vld [vmem:[%s1187_s27 + $0x30] sm:$0xff]  ;;  %s349_s17 = scalar_lea.vmem [#allocation9], %s610_s6 }
  0x74   : > { %s354_s19 = scalar_lea.vmem %s1282_s1, %s612_s13  ;;  %400 = vmatpush.msra.mxu0 %v372_v2  ;;  %v416_v16 = vld [vmem:[%s1187_s27 + $0x28] sm:$0xff]  ;;  %v415_v17 = vld [vmem:[%s1187_s27 + $0x20] sm:$0xff]  ;;  %v414_v18 = vld [vmem:[%s1187_s27 + $0x18] sm:$0xff]  ;;  %s622_s22 = sshll.u32 %s1039_s10, 4 }
  0x75   : > { %p358_p5 = scmp.lt.s32.totalorder %s357_s18, 2  ;;  %v369_v7 = vld [vmem:[%s354_s19] sm:$0xff]  ;;  %433 = vmatpush.msra.mxu1 %v424_v6  ;;  %625 = vmatpush.msra.mxu2 %v424_v6  ;;  %v370_v12 = vld [vmem:[%s354_s19 + $0x8] sm:$0xff]  ;;  %v413_v19 = vld [vmem:[%s1187_s27 + $0x10] sm:$0xff]  ;;  %s469_s11 = sshll.u32 %s349_s17, 4  ;;  %s470_s11 = int_to_ptr.vmem [resolvable:$true] %s469_s11 }
  0x76   : > { %401 = vmatpush.msra.mxu0 %v371_v5  ;;  %p364_p4 = scmp.lt.s32.totalorder %s363_s16, 2  ;;  %v412_v20 = vld [vmem:[%s1187_s27 + $0x8] sm:$0xff]  ;;  %v411_v21 = vld [vmem:[%s1187_s27] sm:$0xff] }
  0x77   : > { %s1356_s18 = smov (!%p358_p5, %s357_s18), 2  ;;  %613 = vmatmul.msk.f32.vlgmr.msra.gmra.mxu0 %vm379_vm0, %v369_v7  ;;  %434 = vmatpush.msra.mxu1 %v423_v8  ;;  %s1329_s14 = smov %s1328_s30 }
  0x78   : > { %s360_s24 = scalar_lea.vmem %s1284_s3, %s1356_s18  ;;  %626 = vmatpush.msra.mxu2 %v423_v8  ;;  %s1358_s16 = smov (!%p364_p4, %s363_s16), 2 }
  0x79   : > { %435 = vmatpush.msra.mxu1 %v422_v9  ;;  %s366_s23 = scalar_lea.vmem %s1286_s5, %s1358_s16  ;;  %v751_v22 = vld [vmem:[%s360_s24] ss:$0 sm:$0xff]  ;;  %s468_s19 = scalar_lea.hbm %s1328_s30, %s622_s22 }
  0x7a   : > { %627 = vmatpush.msra.mxu2 %v422_v9  ;;  %v752_v29 = vld [vmem:[%s366_s23] ss:$0 sm:$0xff]  ;;  %s471_s20 = sshll.u32 %s468_s19, 4  ;;  %s457_s24 = scalar_lea.sflag [#allocation6], %s347_s2  ;;  %s472_s20 = int_to_ptr.hbm [resolvable:$true] %s471_s20 }
  0x7b   : > { %436 = vmatpush.msra.mxu1 %v421_v10  ;;  %s839_s16 = sshra.s32 %s472_s20, 4  ;;  %s845_s23 = scalar_lea.hbm %s1329_s14, 48  ;;  %s840_s16 = int_to_ptr.hbm [resolvable:$true] %s839_s16 }
  0x7c   : > { %628 = vmatpush.msra.mxu2 %v421_v10  ;;  %s841_s21 = scalar_lea.hbm %s840_s16, 16  ;;  %p846_p9 = scmp.lt.s32.totalorder %s840_s16, %s1329_s14 }
  0x7d   : > { %437 = vmatpush.msra.mxu1 %v420_v11  ;;  %p842_p7 = scmp.ne.s32.totalorder %s840_s16, %s841_s21  ;;  %p847_p10 = scmp.lt.s32.totalorder %s845_s23, %s841_s21 }
  0x7e   : > { %629 = vmatpush.msra.mxu2 %v420_v11 }
  0x7f   : > { %614 = vmatmul.msk.f32.gmra.mxu0 %vm379_vm0, %v370_v12  ;;  %438 = vmatpush.msra.mxu1 %v419_v13  ;;  %p843_p1 = pnand %p842_p7, %p1079_p11  ;;  %p848_p12 = por %p847_p10, %p846_p9 }
  0x80   : > { %630 = vmatpush.msra.mxu2 %v419_v13 }
  0x81   : > { %439 = vmatpush.msra.mxu1 %v418_v14  ;;  %p844_p13 = pneg %p843_p1 }
  0x82   : > { %631 = vmatpush.msra.mxu2 %v418_v14 }
  0x83   : > { %440 = vmatpush.msra.mxu1 %v417_v15  ;;  %p849_p6 = pnand %p848_p12, %p844_p13 }
  0x84   : > { %632 = vmatpush.msra.mxu2 %v417_v15 }
  0x85   : > { %441 = vmatpush.msra.mxu1 %v416_v16 }
  0x86   : > { %633 = vmatpush.msra.mxu2 %v416_v16 }
  0x87   : > { %442 = vmatpush.msra.mxu1 %v415_v17 }
  0x88   : > { %634 = vmatpush.msra.mxu2 %v415_v17 }
  0x89   : > { %443 = vmatpush.msra.mxu1 %v414_v18 }
  0x8a   : > { %635 = vmatpush.msra.mxu2 %v414_v18 }
  0x8b   : > { %444 = vmatpush.msra.mxu1 %v413_v19 }
  0x8c   : > { %636 = vmatpush.msra.mxu2 %v413_v19 }
  0x8d   : > { %445 = vmatpush.msra.mxu1 %v412_v20 }
  0x8e   : > { %637 = vmatpush.msra.mxu2 %v412_v20 }
  0x8f   : > { %446 = vmatpush.msra.mxu1 %v411_v21 }
  0x90   : > { %638 = vmatpush.msra.mxu2 %v411_v21 }
  0xf4   : > { %v403_v23 = vpop.f32.mrf.mxu0 }
  0xf5   : > { %v404_v24 = vadd.f32 %v751_v22, %v403_v23 }
  0xf7   : > { %v409_v25 = vmax.f32 %v404_v24, 0.0 }
  0xf9   : > { %447 = vmatmul.f32.vlgmr.msra.gmra.mxu1 %v409_v25 }
  0xfc   : > { %v406_v26 = vpop.f32.mrf.mxu0 }
  0xfd   : > { %v407_v27 = vadd.f32 %v751_v22, %v406_v26 }
  0xff   : > { %v410_v28 = vmax.f32 %v407_v27, 0.0 }
 0x101   : > { %450 = vmatmul.f32.vlgmr.msra.gmra.mxu2 %v410_v28 }
 0x176   : > { %v448_v30 = vpop.f32.mrf.mxu1 }
 0x177   : > { %v449_v31 = vadd.f32 %v752_v29, %v448_v30 }
 0x179   : > { %454 = vst [vmem:[%s349_s17] sm:$0xff] %v449_v31 }
 0x184   : > { %v451_v32 = vpop.f32.mrf.mxu2 }
 0x185   : > { %v452_v33 = vadd.f32 %v752_v29, %v451_v32 }
 0x187   : > { %455 = vst [vmem:[%s349_s17 + $0x8] sm:$0xff] %v452_v33 }
 0x188   : > { %852 = shalt.err (!%p849_p6)
}
 0x189   : > { %s950_s2 = smov 128   ;;  %s951_s6 = smov 8  }
 0x18a   : > { %647 = dma.vmem_to_hbm [thread:$0]  (%p1079_p11), %s470_s11, 256, %s472_s20, %s457_s24, %s950_s2, %s950_s2, %s951_s6  }
 0x18b PF: > { %s1330_s17 = sld [smem:[#allocation18_spill]]  ;;  %p665_p2 = scmp.ge.s32.totalorder %s945_s9, 2 }
 0x18d   : > { %p661_p3 = pnand %p665_p2, %p1084_p0 }
 0x18f   : > { %p662_p8 = pneg %p661_p3 }
 0x191   : > { %s486_s18 = sand.u32 1, %s1330_s17  }
 0x192   : > { %s487_s13 = scalar_lea.sflag [#allocation6], %s486_s18 }
 0x193   : > { %904 = dma.done.wait (%p662_p8), %s487_s13, 256  }
 0x194   : > { %906 = vsyncadd (%p662_p8), %s487_s13, 4294967040  ;;  %s1332_s30 = sld [smem:[#allocation19_spill]]  ;;  %s1334_s19 = smov %s1156_s25 }
 0x195   : > { %s1333_s27 = sld [smem:[#allocation21_spill]]  ;;  %p30_p11 = scmp.ge.s32.totalorder %s1043_s12, 5  }
 0x196   : > { %s1335_s11 = sld [smem:[#allocation20_spill]]  ;;  %s1337_s25 = smov %s913_s26 }
 0x197   : > { %s1336_s8 = sld [smem:[#allocation22_spill]]  ;;  %s1339_s28 = smov %s925_s0 }
 0x198   : > { %s1340_s0 = smov %s929_s29  ;;  %s1341_s29 = smov %s1334_s19 }
 0x199   : > { %s1344_s9 = smov %s1043_s12  ;;  %32 = sbr.rel (!%p30_p11) target bundleno = 17 (0x11), region = 107 }
 0x19a   : > { %s1338_s26 = smov %s1332_s30  ;;  %s1342_s30 = smov %s937_s7 }
 0x19c   : > { %s1343_s7 = smov %s1335_s11 }
 0x19e   :  { %493 = vsyncpa [#allocation5], 1 }
 0x19f   :  { %495 = vsyncpa [#allocation5 + $0x1], 1 }
 0x1a0   :  { %496 = vsyncpa [#allocation8], 1 }
 0x1a1   :  { %498 = vsyncpa [#allocation8 + $0x1], 1 }
 0x1a2   :  { %499 = vsyncpa [#allocation6], 1 }
 0x1a3   :  { %501 = vsyncpa [#allocation6 + $0x1], 1 }

</bundles_post_ra>
